<compile_context>
chip_gen: v5e
topology: v5e:2x2
jax: 0.10.0
libtpu: 0.0.40
codegen_flags: <defaults>
</compile_context>

<pallas_src>
import jax
import jax.numpy as jnp
from jax.experimental import pallas as pl
from jax.experimental.pallas import tpu as pltpu


def _make_density_kernel(*, inv_hw, s_tile, s_total, ragged_s, chunked):
    """Builds the kernel closed over static tiling constants."""
    lanes = 128 if chunked else s_tile          # accumulator lane width
    n_chunks = s_tile // lanes if chunked else 1

    def kernel(x_ref, w1_ref, b1_ref, w2_ref, b2_ref, w3_ref, b3_ref,
               o_ref, acc_ref):
        s = pl.program_id(1)
        is_last = s == pl.num_programs(1) - 1

        # ---- init accumulator at the start of each batch tile ----
        @pl.when(s == 0)
        def _init():
            acc_ref[...] = jnp.zeros_like(acc_ref)

        # ---- streamed partial sums (deferred cross-lane collapse) ----
        if chunked:
            def accumulate(masked):
                acc = acc_ref[...]
                for j in range(n_chunks):
                    xj = x_ref[:, :, pl.ds(j * lanes, lanes)].astype(jnp.float32)
                    if masked:
                        lane = jax.lax.broadcasted_iota(
                            jnp.int32, (1, 1, lanes), 2)
                        valid = (s * s_tile + j * lanes + lane) < s_total
                        xj = jnp.where(valid, xj, 0.0)
                    acc = acc + xj                        # VPU add only
                acc_ref[...] = acc

            if ragged_s:
                # steady state: no mask work at all
                @pl.when(s != pl.num_programs(1) - 1)
                def _steady():
                    accumulate(False)

                # overhanging last tile: mask padding lanes before accumulate
                @pl.when(is_last)
                def _tail():
                    accumulate(True)
            else:
                accumulate(False)
        else:
            # single-step case with S not a multiple of 128: fused upcast+sum
            acc_ref[...] += jnp.sum(x_ref[...], axis=-1, dtype=jnp.float32)

        # ---- finalize: mean + MLP + sigmoid, only on the last step ----
        @pl.when(is_last)
        def _finalize():
            acc = acc_ref[...]
            pooled = (jnp.sum(acc, axis=-1) if chunked else acc) * inv_hw

            h1 = jnp.dot(pooled, w1_ref[...], preferred_element_type=jnp.float32)
            h1 = jnp.maximum(h1 + b1_ref[...], 0.0)

            h2 = jnp.dot(h1, w2_ref[...], preferred_element_type=jnp.float32)
            h2 = jnp.maximum(h2 + b2_ref[...], 0.0)

            logit = jnp.dot(h2, w3_ref[...], preferred_element_type=jnp.float32)
            logit = logit + b3_ref[...]
            # numerically-stable sigmoid: 0.5 * (tanh(x/2) + 1)
            o_ref[...] = (0.5 * (jnp.tanh(0.5 * logit) + 1.0)).astype(o_ref.dtype)

    return kernel


def density_estimation_head(features, params, *, s_tile=None,
                            vmem_budget_bytes=24 * 1024 * 1024,
                            vmem_limit_bytes=48 * 1024 * 1024):
    """features: (B, C, H, W).  Returns (B, 1) density scores (float32)."""
    B, C, H, W = features.shape
    S = H * W
    x = features.reshape(B, C, S)                    # free reshape, stays NCHW
    w1, b1, w2, b2, w3, b3 = params
    hidden = w1.shape[1]
    half = w2.shape[1]
    itemsize = features.dtype.itemsize

    # ---- batch tile: multiple of 8; >= 2 batch steps when B > 8 (megacore) --
    if B <= 8:
        b_tile = B
    else:
        b_tile = min(32, max(8, (B // 2) // 8 * 8))
    num_b = pl.cdiv(B, b_tile)

    # ---- spatial tile selection with honest VMEM accounting ----
    fixed_bytes = sum(int(p.size) * p.dtype.itemsize for p in params)
    fixed_bytes += b_tile * C * 128 * 4              # lane accumulator scratch
    fixed_bytes += b_tile * C * 128 * 4              # per-chunk f32 temp
    stream_budget = max(vmem_budget_bytes - fixed_bytes, 2 * 1024 * 1024)

    if s_tile is None:
        per_s_bytes = 2 * b_tile * C * itemsize      # both pipeline buffers
        s_cap = max(128, (stream_budget // per_s_bytes) // 128 * 128)
        if S <= s_cap:
            s_tile = S
        else:
            # prefer the largest multiple of 128 <= s_cap that divides S
            s_tile = 0
            for cand in range(int(s_cap), 127, -128):
                if S % cand == 0:
                    s_tile = cand
                    break
            if s_tile == 0:
                s_tile = int(s_cap)
    else:
        s_tile = min(int(s_tile), S)

    # enforce BlockSpec legality: s_tile == S or a multiple of 128
    if s_tile >= S or S <= 128:
        s_tile = S
    elif s_tile % 128 != 0:
        s_tile = max(128, (s_tile // 128) * 128)

    num_s = pl.cdiv(S, s_tile)
    ragged_s = (S % s_tile) != 0
    chunked = (s_tile % 128 == 0)

    kernel = _make_density_kernel(
        inv_hw=1.0 / float(S), s_tile=s_tile, s_total=S,
        ragged_s=ragged_s, chunked=chunked)

    acc_shape = (b_tile, C, 128) if chunked else (b_tile, C)

    # ---- cost hint for XLA scheduling around the custom call ----
    flops = B * C * S + 2 * B * (C * hidden + hidden * half + half)
    bytes_accessed = (
        int(x.size) * itemsize
        + sum(int(p.size) * p.dtype.itemsize for p in params)
        + B * 4)
    cost = pl.CostEstimate(flops=int(flops), transcendentals=int(B),
                           bytes_accessed=int(bytes_accessed))

    grid_spec = pltpu.PrefetchScalarGridSpec(
        num_scalar_prefetch=0,
        grid=(num_b, num_s),                         # reduction (spatial) last
        in_specs=[
            # streamed feature tile
            pl.BlockSpec((b_tile, C, s_tile), lambda b, s: (b, 0, s)),
            # weights/biases: constant index maps -> resident in VMEM
            pl.BlockSpec(w1.shape, lambda b, s: (0, 0)),
            pl.BlockSpec(b1.shape, lambda b, s: (0, 0)),
            pl.BlockSpec(w2.shape, lambda b, s: (0, 0)),
            pl.BlockSpec(b2.shape, lambda b, s: (0, 0)),
            pl.BlockSpec(w3.shape, lambda b, s: (0, 0)),
            pl.BlockSpec(b3.shape, lambda b, s: (0, 0)),
        ],
        out_specs=pl.BlockSpec((b_tile, 1), lambda b, s: (b, 0)),
        scratch_shapes=[pltpu.VMEM(acc_shape, jnp.float32)],
    )

    return pl.pallas_call(
        kernel,
        out_shape=jax.ShapeDtypeStruct((B, 1), jnp.float32),
        grid_spec=grid_spec,
        compiler_params=pltpu.CompilerParams(
            dimension_semantics=("parallel", "arbitrary"),
            vmem_limit_bytes=int(vmem_limit_bytes),
        ),
        cost_estimate=cost,
    )(x, w1, b1, w2, b2, w3, b3)


def init_params(key, feature_dim, hidden_dim):
    """Deterministic synthetic parameters (Linear weights stored as (in, out))."""
    k1, k2, k3, k4, k5, k6 = jax.random.split(key, 6)
    half = hidden_dim // 2

    def unif(k, shape, fan_in):
        bound = 1.0 / jnp.sqrt(fan_in)
        return jax.random.uniform(k, shape, jnp.float32, -bound, bound)

    w1 = unif(k1, (feature_dim, hidden_dim), feature_dim)
    b1 = unif(k2, (1, hidden_dim), feature_dim)
    w2 = unif(k3, (hidden_dim, half), hidden_dim)
    b2 = unif(k4, (1, half), hidden_dim)
    w3 = unif(k5, (half, 1), half)
    b3 = unif(k6, (1, 1), half)
    return (w1, b1, w2, b2, w3, b3)


def density_estimation_head_ref(features, params):
    """Pure-JAX reference for validation."""
    w1, b1, w2, b2, w3, b3 = params
    pooled = jnp.mean(features.astype(jnp.float32), axis=(2, 3))
    h1 = jnp.maximum(pooled @ w1 + b1, 0.0)
    h2 = jnp.maximum(h1 @ w2 + b2, 0.0)
    return jax.nn.sigmoid(h2 @ w3 + b3)


if __name__ == "__main__":
    key = jax.random.PRNGKey(0)
    k_p, k_x1, k_x2 = jax.random.split(key, 3)

    C, hidden_dim = 128, 64
    params = init_params(k_p, feature_dim=C, hidden_dim=hidden_dim)

    # --- test 1: single grid step, S=64 not a multiple of 128 (direct path) ---
    B1, H1, W1 = 2, 8, 8
    f1 = jax.random.normal(k_x1, (B1, C, H1, W1), jnp.float32)
    o1 = jax.block_until_ready(density_estimation_head(f1, params))
    r1 = density_estimation_head_ref(f1, params)
    assert o1.shape == (B1, 1)
    assert jnp.allclose(o1, r1, atol=2e-5, rtol=1e-5), (o1, r1)

    # --- test 2: bf16, 2 batch tiles, streamed spatial with ragged last tile ---
    B2, H2, W2 = 16, 24, 24                       # S = 576 = 4*128 + 64
    f2 = jax.random.normal(k_x2, (B2, C, H2, W2), jnp.float32).astype(jnp.bfloat16)
    o2 = jax.block_until_ready(
        density_estimation_head(f2, params, s_tile=128))
    r2 = density_estimation_head_ref(f2, params)
    assert o2.shape == (B2, 1)
    assert jnp.allclose(o2, r2, atol=2e-3, rtol=1e-3), (o2, r2)

    print("KERNEL_OK")
</pallas_src>

<mosaic_0001>
module attributes {stable_mosaic.version = 11 : i64} {
  func.func @kernel(%arg0: i32, %arg1: i32, %arg2: memref<2x128x64xf32, #tpu.memory_space<vmem>>, %arg3: memref<128x64xf32, #tpu.memory_space<vmem>>, %arg4: memref<1x64xf32, #tpu.memory_space<vmem>>, %arg5: memref<64x32xf32, #tpu.memory_space<vmem>>, %arg6: memref<1x32xf32, #tpu.memory_space<vmem>>, %arg7: memref<32x1xf32, #tpu.memory_space<vmem>>, %arg8: memref<1x1xf32, #tpu.memory_space<vmem>>, %arg9: memref<2x1xf32, #tpu.memory_space<vmem>>, %arg10: memref<2x128xf32, #tpu.memory_space<vmem>>) attributes {dimension_semantics = [#tpu.dimension_semantics<parallel>, #tpu.dimension_semantics<arbitrary>], iteration_bounds = array<i64: 1, 1>, scalar_prefetch = 0 : i64, scratch_operands = 1 : i64, tpu.core_type = #tpu.core_type<tc>, window_params = [{transform_indices = @transform_0, window_bounds = array<i64: 2, 128, 64>}, {pipeline_mode = #tpu.pipeline_mode<synchronous>, transform_indices = @transform_1, window_bounds = array<i64: 128, 64>}, {pipeline_mode = #tpu.pipeline_mode<synchronous>, transform_indices = @transform_2, window_bounds = array<i64: 1, 64>}, {pipeline_mode = #tpu.pipeline_mode<synchronous>, transform_indices = @transform_3, window_bounds = array<i64: 64, 32>}, {pipeline_mode = #tpu.pipeline_mode<synchronous>, transform_indices = @transform_4, window_bounds = array<i64: 1, 32>}, {pipeline_mode = #tpu.pipeline_mode<synchronous>, transform_indices = @transform_5, window_bounds = array<i64: 32, 1>}, {pipeline_mode = #tpu.pipeline_mode<synchronous>, transform_indices = @transform_6, window_bounds = array<i64: 1, 1>}, {transform_indices = @transform_7, window_bounds = array<i64: 2, 1>}]} {
    %c0_i32 = arith.constant 0 : i32
    %0 = arith.cmpi eq, %arg1, %c0_i32 : i32
    %c0_i32_0 = arith.constant 0 : i32
    %1 = arith.cmpi eq, %arg1, %c0_i32_0 : i32
    %2 = arith.extui %1 : i1 to i32
    %c0_i32_1 = arith.constant 0 : i32
    %3 = arith.cmpi ne, %2, %c0_i32_1 : i32
    scf.if %3 {
      %cst_9 = arith.constant 0.000000e+00 : f32
      %11 = vector.broadcast %cst_9 : f32 to vector<2x128xf32>
      %c0_10 = arith.constant 0 : index
      %c0_11 = arith.constant 0 : index
      %12 = vector.load %arg10[%c0_10, %c0_11] : memref<2x128xf32, #tpu.memory_space<vmem>>, vector<2x128xf32>
      tpu.vector_store %arg10[%c0_10, %c0_11], %11 {strides = array<i32>} : memref<2x128xf32, #tpu.memory_space<vmem>>, vector<2x128xf32>,
    } else {
    }
    %c0 = arith.constant 0 : index
    %c0_2 = arith.constant 0 : index
    %4 = vector.load %arg10[%c0, %c0_2] : memref<2x128xf32, #tpu.memory_space<vmem>>, vector<2x128xf32>
    %c0_3 = arith.constant 0 : index
    %c0_4 = arith.constant 0 : index
    %c0_5 = arith.constant 0 : index
    %5 = vector.load %arg2[%c0_3, %c0_4, %c0_5] : memref<2x128x64xf32, #tpu.memory_space<vmem>>, vector<2x128x64xf32>
    %cst = arith.constant dense<0.000000e+00> : vector<2x128xf32>
    %6 = vector.multi_reduction <add>, %5, %cst [2] : vector<2x128x64xf32> to vector<2x128xf32>
    %7 = arith.addf %4, %6 : vector<2x128xf32>
    %c0_6 = arith.constant 0 : index
    %c0_7 = arith.constant 0 : index
    %8 = vector.load %arg10[%c0_6, %c0_7] : memref<2x128xf32, #tpu.memory_space<vmem>>, vector<2x128xf32>
    tpu.vector_store %arg10[%c0_6, %c0_7], %7 {strides = array<i32>} : memref<2x128xf32, #tpu.memory_space<vmem>>, vector<2x128xf32>,
    %9 = arith.extui %0 : i1 to i32
    %c0_i32_8 = arith.constant 0 : i32
    %10 = arith.cmpi ne, %9, %c0_i32_8 : i32
    scf.if %10 {
      %c0_9 = arith.constant 0 : index
      %c0_10 = arith.constant 0 : index
      %11 = vector.load %arg10[%c0_9, %c0_10] : memref<2x128xf32, #tpu.memory_space<vmem>>, vector<2x128xf32>
      %cst_11 = arith.constant 1.562500e-02 : f32
      %12 = vector.broadcast %cst_11 : f32 to vector<2x128xf32>
      %13 = arith.mulf %11, %12 : vector<2x128xf32>
      %c0_12 = arith.constant 0 : index
      %c0_13 = arith.constant 0 : index
      %14 = vector.load %arg3[%c0_12, %c0_13] : memref<128x64xf32, #tpu.memory_space<vmem>>, vector<128x64xf32>
      %cst_14 = arith.constant dense<0.000000e+00> : vector<2x64xf32>
      %15 = tpu.matmul %13, %14, %cst_14 {dimension_numbers = #tpu.dot_dimension_numbers<[1], [0], [0], [1], [0, 0, 1, 1], [], []>} : vector<2x128xf32>, vector<128x64xf32>, vector<2x64xf32> -> vector<2x64xf32>
      %c0_15 = arith.constant 0 : index
      %c0_16 = arith.constant 0 : index
      %16 = vector.load %arg4[%c0_15, %c0_16] : memref<1x64xf32, #tpu.memory_space<vmem>>, vector<1x64xf32>
      %17 = vector.broadcast %16 : vector<1x64xf32> to vector<2x64xf32>
      %18 = arith.addf %15, %17 : vector<2x64xf32>
      %cst_17 = arith.constant 0.000000e+00 : f32
      %19 = vector.broadcast %cst_17 : f32 to vector<2x64xf32>
      %20 = arith.maximumf %18, %19 : vector<2x64xf32>
      %c0_18 = arith.constant 0 : index
      %c0_19 = arith.constant 0 : index
      %21 = vector.load %arg5[%c0_18, %c0_19] : memref<64x32xf32, #tpu.memory_space<vmem>>, vector<64x32xf32>
      %cst_20 = arith.constant dense<0.000000e+00> : vector<2x32xf32>
      %22 = tpu.matmul %20, %21, %cst_20 {dimension_numbers = #tpu.dot_dimension_numbers<[1], [0], [0], [1], [0, 0, 1, 1], [], []>} : vector<2x64xf32>, vector<64x32xf32>, vector<2x32xf32> -> vector<2x32xf32>
      %c0_21 = arith.constant 0 : index
      %c0_22 = arith.constant 0 : index
      %23 = vector.load %arg6[%c0_21, %c0_22] : memref<1x32xf32, #tpu.memory_space<vmem>>, vector<1x32xf32>
      %24 = vector.broadcast %23 : vector<1x32xf32> to vector<2x32xf32>
      %25 = arith.addf %22, %24 : vector<2x32xf32>
      %cst_23 = arith.constant 0.000000e+00 : f32
      %26 = vector.broadcast %cst_23 : f32 to vector<2x32xf32>
      %27 = arith.maximumf %25, %26 : vector<2x32xf32>
      %c0_24 = arith.constant 0 : index
      %c0_25 = arith.constant 0 : index
      %28 = vector.load %arg7[%c0_24, %c0_25] : memref<32x1xf32, #tpu.memory_space<vmem>>, vector<32x1xf32>
      %cst_26 = arith.constant dense<0.000000e+00> : vector<2x1xf32>
      %29 = tpu.matmul %27, %28, %cst_26 {dimension_numbers = #tpu.dot_dimension_numbers<[1], [0], [0], [1], [0, 0, 1, 1], [], []>} : vector<2x32xf32>, vector<32x1xf32>, vector<2x1xf32> -> vector<2x1xf32>
      %c0_27 = arith.constant 0 : index
      %c0_28 = arith.constant 0 : index
      %30 = vector.load %arg8[%c0_27, %c0_28] : memref<1x1xf32, #tpu.memory_space<vmem>>, vector<1x1xf32>
      %31 = vector.broadcast %30 : vector<1x1xf32> to vector<2x1xf32>
      %32 = arith.addf %29, %31 : vector<2x1xf32>
      %cst_29 = arith.constant 5.000000e-01 : f32
      %33 = vector.broadcast %cst_29 : f32 to vector<2x1xf32>
      %34 = arith.mulf %33, %32 : vector<2x1xf32>
      %35 = math.tanh %34 : vector<2x1xf32>
      %cst_30 = arith.constant 1.000000e+00 : f32
      %36 = vector.broadcast %cst_30 : f32 to vector<2x1xf32>
      %37 = arith.addf %35, %36 : vector<2x1xf32>
      %cst_31 = arith.constant 5.000000e-01 : f32
      %38 = vector.broadcast %cst_31 : f32 to vector<2x1xf32>
      %39 = arith.mulf %38, %37 : vector<2x1xf32>
      %c0_32 = arith.constant 0 : index
      %c0_33 = arith.constant 0 : index
      %40 = vector.load %arg9[%c0_32, %c0_33] : memref<2x1xf32, #tpu.memory_space<vmem>>, vector<2x1xf32>
      tpu.vector_store %arg9[%c0_32, %c0_33], %39 {strides = array<i32>} : memref<2x1xf32, #tpu.memory_space<vmem>>, vector<2x1xf32>,
    } else {
    }
    return
  }
  func.func @transform_0(%arg0: i32, %arg1: i32) -> (i32, i32, i32) {
    %c0_i32 = arith.constant 0 : i32
    %c0_i32_0 = arith.constant 0 : i32
    return %arg0, %c0_i32, %arg1 : i32, i32, i32
  }
  func.func @transform_1(%arg0: i32, %arg1: i32) -> (i32, i32) {
    %c0_i32 = arith.constant 0 : i32
    %c0_i32_0 = arith.constant 0 : i32
    %c0_i32_1 = arith.constant 0 : i32
    return %c0_i32, %c0_i32_0 : i32, i32
  }
  func.func @transform_2(%arg0: i32, %arg1: i32) -> (i32, i32) {
    %c0_i32 = arith.constant 0 : i32
    %c0_i32_0 = arith.constant 0 : i32
    %c0_i32_1 = arith.constant 0 : i32
    return %c0_i32, %c0_i32_0 : i32, i32
  }
  func.func @transform_3(%arg0: i32, %arg1: i32) -> (i32, i32) {
    %c0_i32 = arith.constant 0 : i32
    %c0_i32_0 = arith.constant 0 : i32
    %c0_i32_1 = arith.constant 0 : i32
    return %c0_i32, %c0_i32_0 : i32, i32
  }
  func.func @transform_4(%arg0: i32, %arg1: i32) -> (i32, i32) {
    %c0_i32 = arith.constant 0 : i32
    %c0_i32_0 = arith.constant 0 : i32
    %c0_i32_1 = arith.constant 0 : i32
    return %c0_i32, %c0_i32_0 : i32, i32
  }
  func.func @transform_5(%arg0: i32, %arg1: i32) -> (i32, i32) {
    %c0_i32 = arith.constant 0 : i32
    %c0_i32_0 = arith.constant 0 : i32
    %c0_i32_1 = arith.constant 0 : i32
    return %c0_i32, %c0_i32_0 : i32, i32
  }
  func.func @transform_6(%arg0: i32, %arg1: i32) -> (i32, i32) {
    %c0_i32 = arith.constant 0 : i32
    %c0_i32_0 = arith.constant 0 : i32
    %c0_i32_1 = arith.constant 0 : i32
    return %c0_i32, %c0_i32_0 : i32, i32
  }
  func.func @transform_7(%arg0: i32, %arg1: i32) -> (i32, i32) {
    %c0_i32 = arith.constant 0 : i32
    %c0_i32_0 = arith.constant 0 : i32
    return %arg0, %c0_i32 : i32, i32
  }
}

</mosaic_0001>

<bundles_post_ra>
// kernel: tpu_custom_call.1
= control target key start
LH: loop header
LB: loop body
LE: loop exit
PB: predicated region body
PF: predicated region fallthrough
CT: control target
= control target key end

     0   :  { %vm66_vm0 = vcmask 523264   ;;  %vm200_vm1 = vcmask 130112   ;;  %vm204_vm2 = vcmask 195712   ;;  %vm208_vm3 = vcmask 261312   ;;  %s810_s0 = inlined_call_operand.vmem [shape: f32[2,128,64], index: 0, kind: input, shape index: {}]   ;;  %s811_s2 = inlined_call_operand.vmem [shape: f32[1,64], index: 2, kind: input, shape index: {}]   ;;  %s812_s1 = inlined_call_operand.vmem [shape: f32[128,64], index: 1, kind: input, shape index: {}]   ;;  %s813_s3 = inlined_call_operand.vmem [shape: f32[64,32], index: 3, kind: input, shape index: {}]   ;;  %s814_s4 = inlined_call_operand.vmem [shape: f32[1,32], index: 4, kind: input, shape index: {}]   ;;  %s815_s5 = inlined_call_operand.vmem [shape: f32[32,1], index: 5, kind: input, shape index: {}]   ;;  %s816_s6 = inlined_call_operand.<no memory space> [shape: f32[1,1], index: 6, kind: input, shape index: {}]   ;;  %s817_s7 = inlined_call_operand.vmem [shape: f32[2,1], index: 7, kind: output, shape index: {}]  }
   0x1   :  { %v50_v0 = vld [vmem:[%s810_s0 + $0x80] sm:$0xff]  ;;  %v36_v2 = vld [vmem:[%s810_s0 + $0x10] sm:$0xff]  ;;  %v51_v6 = vld [vmem:[%s810_s0 + $0x88] sm:$0xff]  ;;  %vm212_vm4 = vcmask 326912   ;;  %vm216_vm5 = vcmask 392512   ;;  %vm220_vm6 = vcmask 458112  }
   0x2   :  { %v34_v1 = vld [vmem:[%s810_s0] sm:$0xff]  ;;  %v115_v3 = vsel %vm66_vm0, %v50_v0, 0.0  ;;  %v73_v5 = vsel %vm66_vm0, %v36_v2, 0.0  ;;  %v35_v7 = vld [vmem:[%s810_s0 + $0x8] sm:$0xff]  ;;  %v52_v8 = vld [vmem:[%s810_s0 + $0x90] sm:$0xff]  ;;  %v118_v9 = vsel %vm66_vm0, %v51_v6, 0.0 }
   0x3   :  { %v67_v4 = vsel %vm66_vm0, %v34_v1, 0.0  ;;  %116 = vadd.xlane.f32.xlu1 %v115_v3  ;;  %74 = vadd.xlane.f32.xlu2 %v73_v5  ;;  %v70_v10 = vsel %vm66_vm0, %v35_v7, 0.0  ;;  %v121_v11 = vsel %vm66_vm0, %v52_v8, 0.0  ;;  %v53_v12 = vld [vmem:[%s810_s0 + $0x98] sm:$0xff]  ;;  %v38_v14 = vld [vmem:[%s810_s0 + $0x20] sm:$0xff]  ;;  %v39_v18 = vld [vmem:[%s810_s0 + $0x28] sm:$0xff] }
   0x4   :  { %68 = vadd.xlane.f32.xlu0 %v67_v4  ;;  %v37_v13 = vld [vmem:[%s810_s0 + $0x18] sm:$0xff]  ;;  %v124_v15 = vsel %vm66_vm0, %v53_v12, 0.0  ;;  %v79_v17 = vsel %vm66_vm0, %v38_v14, 0.0  ;;  %v54_v19 = vld [vmem:[%s810_s0 + $0xa0] sm:$0xff]  ;;  %v55_v20 = vld [vmem:[%s810_s0 + $0xa8] sm:$0xff]  ;;  %v82_v21 = vsel %vm66_vm0, %v39_v18, 0.0 }
   0x5   :  { %v76_v16 = vsel %vm66_vm0, %v37_v13, 0.0  ;;  %v127_v22 = vsel %vm66_vm0, %v54_v19, 0.0  ;;  %v130_v23 = vsel %vm66_vm0, %v55_v20, 0.0  ;;  %v56_v24 = vld [vmem:[%s810_s0 + $0xb0] sm:$0xff]  ;;  %v41_v26 = vld [vmem:[%s810_s0 + $0x38] sm:$0xff]  ;;  %v42_v30 = vld [vmem:[%s810_s0 + $0x40] sm:$0xff] }
   0x6   :  { %v40_v25 = vld [vmem:[%s810_s0 + $0x30] sm:$0xff]  ;;  %v133_v27 = vsel %vm66_vm0, %v56_v24, 0.0  ;;  %v88_v29 = vsel %vm66_vm0, %v41_v26, 0.0  ;;  %v57_v31 = vld [vmem:[%s810_s0 + $0xb8] sm:$0xff]  ;;  %v58_v32 = vld [vmem:[%s810_s0 + $0xc0] sm:$0xff]  ;;  %v91_v33 = vsel %vm66_vm0, %v42_v30, 0.0 }
   0x7   :  { %v85_v28 = vsel %vm66_vm0, %v40_v25, 0.0  ;;  %v136_v34 = vsel %vm66_vm0, %v57_v31, 0.0  ;;  %v139_v35 = vsel %vm66_vm0, %v58_v32, 0.0  ;;  %v59_v36 = vld [vmem:[%s810_s0 + $0xc8] sm:$0xff]  ;;  %v44_v38 = vld [vmem:[%s810_s0 + $0x50] sm:$0xff]  ;;  %v45_v42 = vld [vmem:[%s810_s0 + $0x58] sm:$0xff]  ;;  %v195_v25 = vlaneseq }
   0x8   :  { %v43_v37 = vld [vmem:[%s810_s0 + $0x48] sm:$0xff]  ;;  %v142_v39 = vsel %vm66_vm0, %v59_v36, 0.0  ;;  %v97_v41 = vsel %vm66_vm0, %v44_v38, 0.0  ;;  %v60_v43 = vld [vmem:[%s810_s0 + $0xd0] sm:$0xff]  ;;  %v61_v44 = vld [vmem:[%s810_s0 + $0xd8] sm:$0xff]  ;;  %v100_v45 = vsel %vm66_vm0, %v45_v42, 0.0 }
   0x9   :  { %v94_v40 = vsel %vm66_vm0, %v43_v37, 0.0  ;;  %v145_v46 = vsel %vm66_vm0, %v60_v43, 0.0  ;;  %v148_v47 = vsel %vm66_vm0, %v61_v44, 0.0  ;;  %v62_v48 = vld [vmem:[%s810_s0 + $0xe0] sm:$0xff]  ;;  %v47_v50 = vld [vmem:[%s810_s0 + $0x68] sm:$0xff]  ;;  %v48_v54 = vld [vmem:[%s810_s0 + $0x70] sm:$0xff] }
   0xa   :  { %v46_v49 = vld [vmem:[%s810_s0 + $0x60] sm:$0xff]  ;;  %v151_v51 = vsel %vm66_vm0, %v62_v48, 0.0  ;;  %v106_v53 = vsel %vm66_vm0, %v47_v50, 0.0  ;;  %v63_v55 = vld [vmem:[%s810_s0 + $0xe8] sm:$0xff]  ;;  %v64_v56 = vld [vmem:[%s810_s0 + $0xf0] sm:$0xff]  ;;  %v109_v57 = vsel %vm66_vm0, %v48_v54, 0.0 }
   0xb   :  { %119 = vadd.xlane.f32.xlu1 %v118_v9  ;;  %122 = vadd.xlane.f32.xlu2 %v121_v11  ;;  %v103_v52 = vsel %vm66_vm0, %v46_v49, 0.0  ;;  %v154_v58 = vsel %vm66_vm0, %v63_v55, 0.0  ;;  %v157_v59 = vsel %vm66_vm0, %v64_v56, 0.0  ;;  %v65_v60 = vld [vmem:[%s810_s0 + $0xf8] sm:$0xff]  ;;  %v311_v18 = vld [vmem:[%s812_s1 + $0x60] sm:$0xff]  ;;  %v308_v24 = vld [vmem:[%s812_s1 + $0x48] sm:$0xff] }
   0xc   :  { %71 = vadd.xlane.f32.xlu0 %v70_v10  ;;  %v49_v61 = vld [vmem:[%s810_s0 + $0x78] sm:$0xff]  ;;  %v160_v62 = vsel %vm66_vm0, %v65_v60, 0.0  ;;  %v307_v26 = vld [vmem:[%s812_s1 + $0x40] sm:$0xff]  ;;  %v659_v30 = vand.u32 127, %v195_v25  ;;  %v300_v55 = vld [vmem:[%s812_s1 + $0x8] sm:$0xff]  ;;  %vm224_vm7 = vcmask 523712  }
   0xd   :  { %v112_v63 = vsel %vm66_vm0, %v49_v61, 0.0  ;;  %v306_v32 = vld [vmem:[%s812_s1 + $0x38] sm:$0xff]  ;;  %vm228_vm8 = vcmask 589312   ;;  %vm232_vm9 = vcmask 654912   ;;  %vm236_vm10 = vcmask 720512  }
   0xe   :  { %v206_v38 = vadd.s32 4294967272, %v659_v30  ;;  %v210_v49 = vadd.s32 4294967264, %v659_v30  ;;  %v214_v50 = vadd.s32 4294967256, %v659_v30  ;;  %vm240_vm11 = vcmask 786112  }
   0xf   :  { %vm244_vm12 = vcmask 851712   ;;  %vm248_vm13 = vcmask 917312   ;;  %vm252_vm14 = vcmask 982912   ;;  %vm256_vm15 = vcmask 1048512  }
  0x13   :  { %125 = vadd.xlane.f32.xlu1 %v124_v15  ;;  %80 = vadd.xlane.f32.xlu2 %v79_v17  ;;  %v314_v15 = vld [vmem:[%s812_s1 + $0x78] sm:$0xff]  ;;  %v312_v17 = vld [vmem:[%s812_s1 + $0x68] sm:$0xff] }
  0x14   :  { %77 = vadd.xlane.f32.xlu0 %v76_v16  ;;  %319 = vmatpush.msra.mxu0 %v314_v15  ;;  %v313_v16 = vld [vmem:[%s812_s1 + $0x70] sm:$0xff] }
  0x16   :  { %320 = vmatpush.msra.mxu0 %v313_v16 }
  0x18   :  { %321 = vmatpush.msra.mxu0 %v312_v17 }
  0x1a   :  { %322 = vmatpush.msra.mxu0 %v311_v18 }
  0x1b   :  { %83 = vadd.xlane.f32.xlu1 %v82_v21  ;;  %131 = vadd.xlane.f32.xlu2 %v130_v23  ;;  %v309_v23 = vld [vmem:[%s812_s1 + $0x50] sm:$0xff] }
  0x1c   :  { %128 = vadd.xlane.f32.xlu0 %v127_v22  ;;  %v310_v22 = vld [vmem:[%s812_s1 + $0x58] sm:$0xff] }
  0x1d   :  { %323 = vmatpush.msra.mxu0 %v310_v22  ;;  %v234_v22 = vadd.s32 4294967216, %v659_v30 }
  0x1f   :  { %324 = vmatpush.msra.mxu0 %v309_v23  ;;  %v345_v23 = vld [vmem:[%s813_s3 + $0x28] sm:$0xff] }
  0x21   :  { %325 = vmatpush.msra.mxu0 %v308_v24 }
  0x23   :  { %134 = vadd.xlane.f32.xlu1 %v133_v27  ;;  %89 = vadd.xlane.f32.xlu2 %v88_v29  ;;  %v426_v27 = vmov 0.0  }
  0x24   :  { %86 = vadd.xlane.f32.xlu0 %v85_v28  ;;  %32 = vst [vmem:[#allocation2] sm:$0x3] %v426_v27  ;;  %326 = vmatpush.msra.mxu0 %v307_v26 }
  0x26   :  { %327 = vmatpush.msra.mxu0 %v306_v32 }
  0x2b   :  { %92 = vadd.xlane.f32.xlu1 %v91_v33  ;;  %140 = vadd.xlane.f32.xlu2 %v139_v35  ;;  %v198_v33 = vadd.s32 4294967288, %v659_v30  ;;  %v304_v35 = vld [vmem:[%s812_s1 + $0x28] sm:$0xff] }
  0x2c   :  { %137 = vadd.xlane.f32.xlu0 %v136_v34  ;;  %v305_v34 = vld [vmem:[%s812_s1 + $0x30] sm:$0xff] }
  0x2d   :  { %328 = vmatpush.msra.mxu0 %v305_v34  ;;  %v238_v34 = vadd.s32 4294967208, %v659_v30 }
  0x2f   :  { %329 = vmatpush.msra.mxu0 %v304_v35  ;;  %v344_v35 = vld [vmem:[%s813_s3 + $0x20] sm:$0xff] }
  0x33   :  { %143 = vadd.xlane.f32.xlu1 %v142_v39  ;;  %98 = vadd.xlane.f32.xlu2 %v97_v41  ;;  %v303_v39 = vld [vmem:[%s812_s1 + $0x20] sm:$0xff]  ;;  %v202_v41 = vadd.s32 4294967280, %v659_v30 }
  0x34   :  { %95 = vadd.xlane.f32.xlu0 %v94_v40  ;;  %v302_v40 = vld [vmem:[%s812_s1 + $0x18] sm:$0xff]  ;;  %330 = vmatpush.msra.mxu0 %v303_v39  ;;  %v246_v39 = vadd.s32 4294967192, %v659_v30 }
  0x36   :  { %331 = vmatpush.msra.mxu0 %v302_v40 }
  0x3b   :  { %101 = vadd.xlane.f32.xlu1 %v100_v45  ;;  %149 = vadd.xlane.f32.xlu2 %v148_v47  ;;  %v301_v47 = vld [vmem:[%s812_s1 + $0x10] sm:$0xff] }
  0x3c   :  { %146 = vadd.xlane.f32.xlu0 %v145_v46  ;;  %332 = vmatpush.msra.mxu0 %v301_v47 }
  0x3e   :  { %333 = vmatpush.msra.mxu0 %v300_v55  ;;  %v254_v55 = vadd.s32 4294967176, %v659_v30 }
  0x43   :  { %152 = vadd.xlane.f32.xlu1 %v151_v51  ;;  %107 = vadd.xlane.f32.xlu2 %v106_v53 }
  0x44   :  { %104 = vadd.xlane.f32.xlu0 %v103_v52 }
  0x4b   :  { %110 = vadd.xlane.f32.xlu1 %v109_v57  ;;  %158 = vadd.xlane.f32.xlu2 %v157_v59  ;;  %v299_v59 = vld [vmem:[%s812_s1] sm:$0xff] }
  0x4c   :  { %155 = vadd.xlane.f32.xlu0 %v154_v58  ;;  %v218_v58 = vadd.s32 4294967248, %v659_v30  ;;  %334 = vmatpush.msra.mxu0 %v299_v59 }
  0x53   :  { %161 = vadd.xlane.f32.xlu1 %v160_v62 }
  0x54   :  { %113 = vadd.xlane.f32.xlu0 %v112_v63  ;;  %v222_v63 = vadd.s32 4294967240, %v659_v30 }
  0x76   :  { %v595_v0 = vpop.xlane.xlu1 %116  ;;  %v599_v2 = vpop.xlane.xlu2 %74 }
  0x77   :  { %v597_v1 = vpop.xlane.xlu0 %68  ;;  %v258_v44 = vperm.slane %v595_v0, %v659_v30  ;;  %v203_v56 = vperm.slane %v599_v2, %v202_v41 }
  0x78   :  { %v197_v45 = vperm.slane %v597_v1, %v659_v30 }
  0x7e   :  { %v601_v3 = vpop.xlane.xlu1 %119  ;;  %v605_v5 = vpop.xlane.xlu2 %122 }
  0x7f   :  { %v603_v4 = vpop.xlane.xlu0 %71  ;;  %v259_v36 = vperm.slane %v601_v3, %v198_v33  ;;  %v261_v48 = vperm.slane %v605_v5, %v202_v41 }
  0x80   :  { %v199_v37 = vperm.slane %v603_v4, %v198_v33 }
  0x81   :  { %v260_v51 = vsel %vm200_vm1, %v259_v36, %v258_v44 }
  0x82   :  { %v201_v52 = vsel %vm200_vm1, %v199_v37, %v197_v45  ;;  %v262_v60 = vsel %vm204_vm2, %v261_v48, %v260_v51  ;;  %vm289_vm1 = vcmask 1041409  }
  0x83   :  { %v205_v61 = vsel %vm204_vm2, %v203_v56, %v201_v52  ;;  %vm412_vm2 = vcmask 1024  }
  0x86   :  { %v607_v6 = vpop.xlane.xlu1 %125  ;;  %v611_v8 = vpop.xlane.xlu2 %80 }
  0x87   :  { %v609_v7 = vpop.xlane.xlu0 %77  ;;  %v263_v53 = vperm.slane %v607_v6, %v206_v38  ;;  %v211_v62 = vperm.slane %v611_v8, %v210_v49 }
  0x88   :  { %v207_v54 = vperm.slane %v609_v7, %v206_v38  ;;  %v226_v7 = vadd.s32 4294967232, %v659_v30 }
  0x89   :  { %v264_v0 = vsel %vm208_vm3, %v263_v53, %v262_v60 }
  0x8a   :  { %v209_v1 = vsel %vm208_vm3, %v207_v54, %v205_v61 }
  0x8e   :  { %v613_v9 = vpop.xlane.xlu1 %83  ;;  %v617_v11 = vpop.xlane.xlu2 %131 }
  0x8f   :  { %v615_v10 = vpop.xlane.xlu0 %128  ;;  %v215_v2 = vperm.slane %v613_v9, %v214_v50  ;;  %v267_v3 = vperm.slane %v617_v11, %v214_v50  ;;  %v230_v9 = vadd.s32 4294967224, %v659_v30  ;;  %v347_v11 = vld [vmem:[%s813_s3 + $0x38] sm:$0xff] }
  0x90   :  { %v265_v57 = vperm.slane %v615_v10, %v210_v49  ;;  %363 = vmatpush.msra.mxu1 %v347_v11  ;;  %v379_v11 = vld [vmem:[%s815_s5 + $0x18] sm:$0xff] }
  0x91   :  { %400 = vmatpush.msra.mxu2 %v379_v11 }
  0x92   :  { %v266_v4 = vsel %vm212_vm4, %v265_v57, %v264_v0 }
  0x93   :  { %v268_v18 = vsel %vm216_vm5, %v267_v3, %v266_v4  ;;  %v33_v4 = vld [vmem:[#allocation2] sm:$0x3] }
  0x96   :  { %v619_v12 = vpop.xlane.xlu1 %134  ;;  %v623_v14 = vpop.xlane.xlu2 %89 }
  0x97   :  { %v621_v13 = vpop.xlane.xlu0 %86  ;;  %v269_v5 = vperm.slane %v619_v12, %v218_v58  ;;  %v346_v12 = vld [vmem:[%s813_s3 + $0x30] sm:$0xff] }
  0x98   :  { %v219_v6 = vperm.slane %v621_v13, %v218_v58  ;;  %v213_v13 = vsel %vm212_vm4, %v211_v62, %v209_v1  ;;  %364 = vmatpush.msra.mxu1 %v346_v12  ;;  %v421_v12 = vld [vmem:[%s811_s2] ss:$0 sm:$0xff] }
  0x99   :  { %v217_v17 = vsel %vm216_vm5, %v215_v2, %v213_v13  ;;  %v270_v24 = vsel %vm220_vm6, %v269_v5, %v268_v18 }
  0x9a   :  { %v221_v25 = vsel %vm220_vm6, %v219_v6, %v217_v17  ;;  %365 = vmatpush.msra.mxu1 %v345_v23  ;;  %v376_v23 = vld [vmem:[%s815_s5] sm:$0xff] }
  0x9c   :  { %366 = vmatpush.msra.mxu1 %v344_v35 }
  0x9e   :  { %v637_v19 = vpop.xlane.xlu1 %92  ;;  %v641_v21 = vpop.xlane.xlu2 %140 }
  0x9f   :  { %v639_v20 = vpop.xlane.xlu0 %137  ;;  %v227_v26 = vperm.slane %v637_v19, %v226_v7  ;;  %v273_v27 = vperm.slane %v641_v21, %v226_v7  ;;  %v242_v19 = vadd.s32 4294967200, %v659_v30 }
  0xa0   :  { %v271_v15 = vperm.slane %v639_v20, %v222_v63  ;;  %v223_v20 = vperm.slane %v623_v14, %v222_v63 }
  0xa2   :  { %v272_v32 = vsel %vm224_vm7, %v271_v15, %v270_v24  ;;  %v225_v21 = vsel %vm224_vm7, %v223_v20, %v221_v25  ;;  %v342_v15 = vld [vmem:[%s813_s3 + $0x10] sm:$0xff]  ;;  %v12_v24 = vstv %s816_s6  ;;  %v422_v25 = vld [vmem:[%s814_s4] ss:$0 sm:$0xff] }
  0xa3   :  { %v274_v37 = vsel %vm228_vm8, %v273_v27, %v272_v32  ;;  %v378_v20 = vld [vmem:[%s815_s5 + $0x10] sm:$0xff]  ;;  %13 = vst [vmem:[#allocation3] sm:$0x1] %v12_v24 }
  0xa4   :  { %401 = vmatpush.msra.mxu2 %v378_v20 }
  0xa6   :  { %v655_v28 = vpop.xlane.xlu1 %143  ;;  %v661_v31 = vpop.xlane.xlu2 %98 }
  0xa7   :  { %v657_v29 = vpop.xlane.xlu0 %95  ;;  %v275_v33 = vperm.slane %v655_v28, %v230_v9  ;;  %v343_v28 = vld [vmem:[%s813_s3 + $0x18] sm:$0xff]  ;;  %v235_v38 = vperm.slane %v661_v31, %v234_v22  ;;  %v250_v31 = vadd.s32 4294967184, %v659_v30 }
  0xa8   :  { %v231_v14 = vperm.slane %v657_v29, %v230_v9  ;;  %v229_v29 = vsel %vm228_vm8, %v227_v26, %v225_v21  ;;  %367 = vmatpush.msra.mxu1 %v343_v28  ;;  %v341_v9 = vld [vmem:[%s813_s3 + $0x8] sm:$0xff] }
  0xaa   :  { %v233_v44 = vsel %vm232_vm9, %v231_v14, %v229_v29  ;;  %368 = vmatpush.msra.mxu1 %v342_v15 }
  0xab   :  { %v237_v53 = vsel %vm236_vm10, %v235_v38, %v233_v44 }
  0xac   :  { %369 = vmatpush.msra.mxu1 %v341_v9 }
  0xae   :  { %v683_v42 = vpop.xlane.xlu1 %101  ;;  %v691_v46 = vpop.xlane.xlu2 %149 }
  0xaf   :  { %v685_v43 = vpop.xlane.xlu0 %146  ;;  %v239_v45 = vperm.slane %v683_v42, %v238_v34  ;;  %v279_v47 = vperm.slane %v691_v46, %v238_v34 }
  0xb0   :  { %v277_v36 = vperm.slane %v685_v43, %v234_v22  ;;  %v276_v43 = vsel %vm232_vm9, %v275_v33, %v274_v37  ;;  %v377_v22 = vld [vmem:[%s815_s5 + $0x8] sm:$0xff]  ;;  %v423_v33 = vld [vmem:[#allocation3] ss:$0 sm:$0xff] }
  0xb1   :  { %v241_v54 = vsel %vm240_vm11, %v239_v45, %v237_v53  ;;  %402 = vmatpush.msra.mxu2 %v377_v22 }
  0xb2   :  { %v278_v48 = vsel %vm236_vm10, %v277_v36, %v276_v43 }
  0xb3   :  { %v280_v42 = vsel %vm240_vm11, %v279_v47, %v278_v48  ;;  %403 = vmatpush.msra.mxu2 %v376_v23 }
  0xb6   :  { %v720_v10 = vpop.xlane.xlu1 %152  ;;  %v726_v16 = vpop.xlane.xlu2 %107 }
  0xb7   :  { %v722_v8 = vpop.xlane.xlu0 %104  ;;  %v281_v49 = vperm.slane %v720_v10, %v242_v19  ;;  %v247_v46 = vperm.slane %v726_v16, %v246_v39  ;;  %v340_v16 = vld [vmem:[%s813_s3] sm:$0xff] }
  0xb8   :  { %v243_v50 = vperm.slane %v722_v8, %v242_v19  ;;  %370 = vmatpush.msra.mxu1 %v340_v16 }
  0xb9   :  { %v282_v56 = vsel %vm244_vm12, %v281_v49, %v280_v42 }
  0xba   :  { %v245_v57 = vsel %vm244_vm12, %v243_v50, %v241_v54 }
  0xbb   :  { %v249_v63 = vsel %vm248_vm13, %v247_v46, %v245_v57 }
  0xbe   :  { %v111_v40 = vpop.xlane.xlu1 %110  ;;  %v159_v52 = vpop.xlane.xlu2 %158 }
  0xbf   :  { %v156_v41 = vpop.xlane.xlu0 %155  ;;  %v251_v58 = vperm.slane %v111_v40, %v250_v31  ;;  %v285_v59 = vperm.slane %v159_v52, %v250_v31 }
  0xc0   :  { %v283_v51 = vperm.slane %v156_v41, %v246_v39 }
  0xc1   :  { %v253_v2 = vsel %vm252_vm14, %v251_v58, %v249_v63 }
  0xc2   :  { %v284_v60 = vsel %vm248_vm13, %v283_v51, %v282_v56 }
  0xc3   :  { %v286_v3 = vsel %vm252_vm14, %v285_v59, %v284_v60 }
  0xc6   :  { %v162_v61 = vpop.xlane.xlu1 %161 }
  0xc7   :  { %v114_v62 = vpop.xlane.xlu0 %113  ;;  %v287_v0 = vperm.slane %v162_v61, %v254_v55 }
  0xc8   :  { %v255_v1 = vperm.slane %v114_v62, %v254_v55 }
  0xc9   :  { %v288_v5 = vsel %vm256_vm15, %v287_v0, %v286_v3 }
  0xca   :  { %v257_v6 = vsel %vm256_vm15, %v255_v1, %v253_v2 }
  0xcb   :  { %v290_v7 = vsel %vm289_vm1, %v288_v5, %v257_v6 }
  0xcc   :  { %v292_v30 = vadd.f32 %v290_v7, %v33_v4 }
  0xce   :  { %293 = vst [vmem:[#allocation2] sm:$0x3] %v292_v30 }
  0xd5   :  { %v297_v10 = vld [vmem:[#allocation2] sm:$0x3] }
  0xd6   :  { %v298_v8 = vmul.f32 0.015625, %v297_v10 }
  0xd8   :  { %335 = vmatmul.f32.vlgmr.msra.gmra.mxu0 %v298_v8 }
 0x155   :  { %v336_v13 = vpop.f32.mrf.mxu0 }
 0x156   :  { %v337_v17 = vadd.f32 %v421_v12, %v336_v13 }
 0x158   :  { %v339_v18 = vmax.f32 %v337_v17, 0.0 }
 0x15a   :  { %418 = vmatmul.msk.f32.vlgmr.msra.gmra.mxu1 %vm66_vm0, %v339_v18  ;;  %vm384_vm0 = vcmask 261120  }
 0x1d7   :  { %v372_v26 = vpop.f32.mrf.mxu1 }
 0x1d8   :  { %v373_v27 = vadd.f32 %v422_v25, %v372_v26 }
 0x1da   :  { %v375_v32 = vmax.f32 %v373_v27, 0.0 }
 0x1dc   :  { %419 = vmatmul.msk.f32.vlgmr.msra.gmra.mxu2 %vm384_vm0, %v375_v32 }
 0x25f   :  { %v405_v14 = vpop.f32.mrf.mxu2 }
 0x260   :  { %v406_v34 = vadd.f32 %v423_v33, %v405_v14 }
 0x262   :  { %v408_v35 = vmul.f32 0.5, %v406_v34 }
 0x264   :  { %424 = vtanh.f32 %v408_v35 }
 0x26a   :  { %v425_v36 = vpop.eup %424 }
 0x26b   :  { %v410_v19 = vadd.f32 1.0, %v425_v36 }
 0x26d   :  { %v411_v21 = vmul.f32 0.5, %v410_v19 }
 0x26f   :  { %413 = vst.msk [vmem:[%s817_s7] sm:$0x3] %vm412_vm2, %v411_v21 }

</bundles_post_ra>
